<compile_context>
chip_gen: v5e
topology: v5e:2x2
jax: 0.10.0
libtpu: 0.0.40
codegen_flags: <defaults>
</compile_context>

<pallas_src>
import jax
import jax.numpy as jnp
from jax.experimental import pallas as pl
from jax.experimental.pallas import tpu as pltpu

LANES = 128
SUBLANES = 8
ROW_ALIGN = 16            # bf16 packs 16 sublanes / vreg; free for f32
MAX_TILE_ROWS = 4096      # (4096,128) f32 tile = 2 MiB; 8 MiB double-buffered
PAD_LOGIT = -1.0e4        # sentinel: padded element (target 0) gives exactly 0 BCE


def _round_up(n, m):
    return ((n + m - 1) // m) * m


def _num_tensorcore_splits():
    """2-way grid split only on v7x (2 TensorCores/chip); 1 on v5e/v6e."""
    # TODO(synk): on v7x, verify with an xprof trace that the size-2 "parallel"
    # axis actually shards across both TensorCores (else switch to CORE_PARALLEL
    # / pl.core_map).  Strings are used here because they compile everywhere.
    try:
        kind = jax.devices()[0].device_kind.lower()
    except Exception:
        return 1
    return 2 if ("v7" in kind or "7x" in kind) else 1


def _make_focal_bce_partial_kernel(tile_rows, steps, rows, tiles, need_mask):
    """Build the per-block BCE partial-sum kernel (all args are static ints)."""

    def kernel(x_ref, t_ref, o_ref):
        # Output block (indexed only by the core-split axis) is the accumulator
        # across the 'arbitrary' step axis.
        @pl.when(pl.program_id(1) == 0)
        def _init():
            o_ref[...] = jnp.zeros_like(o_ref)

        x = x_ref[...].astype(jnp.float32)
        t = t_ref[...].astype(jnp.float32)

        # Stable BCE on logits:
        #   -log(sigmoid(x))     = softplus(-x)
        #   -log(1 - sigmoid(x)) = softplus(-x) + x
        # torch clamps each log term at -100 => per-term contribution caps at 100.
        s = jax.nn.softplus(-x)
        bce = t * jnp.minimum(s, 100.0) + (1.0 - t) * jnp.minimum(s + x, 100.0)

        def fold(v):
            # (tile_rows,128) -> (8,128) partial sums via plain VPU adds;
            # groups of 8 rows are whole vregs (tile_rows % 8 == 0).
            return jnp.sum(v.reshape(-1, SUBLANES, LANES), axis=0)

        if need_mask:
            b = pl.program_id(0) * steps + pl.program_id(1)  # global block idx

            @pl.when(b != tiles - 1)
            def _full_block():
                o_ref[...] += fold(bce)

            @pl.when(b == tiles - 1)
            def _tail_block():
                # Only the globally-last block is partial: mask rows >= rows
                # (their contents are unspecified partial-block reads).
                row_idx = b * tile_rows + jax.lax.broadcasted_iota(
                    jnp.int32, (tile_rows, LANES), 0)
                o_ref[...] += fold(jnp.where(row_idx < rows, bce, 0.0))
        else:
            o_ref[...] += fold(bce)

    return kernel


def focal_loss(inputs, targets, alpha=1.0, gamma=2.0):
    """Pallas TPU implementation of FocalLoss.forward (weight=None)."""
    # TODO(synk): per-element `weight` of F.binary_cross_entropy not implemented
    # (module default weight=None).
    x = jnp.reshape(inputs, (-1,))
    t = jnp.reshape(targets, (-1,))
    n = x.shape[0]

    # Common case (n % 128 == 0 and >= 16 rows): reshape is free, no copies.
    # Rare fallback: sentinel-pad to the next 128 multiple (and to >= 16 rows
    # for tiny inputs) -- softplus(1e4) + (-1e4) == 0 exactly in f32, so padded
    # elements contribute exactly 0 BCE.  This is the only path that copies.
    min_len = ROW_ALIGN * LANES
    padded_len = max(_round_up(n, LANES), min_len)
    if padded_len != n:
        x = jnp.pad(x, (0, padded_len - n), constant_values=PAD_LOGIT)
        t = jnp.pad(t, (0, padded_len - n))

    rows = padded_len // LANES
    x2 = x.reshape(rows, LANES)
    t2 = t.reshape(rows, LANES)

    # Tile rows: multiple of 16, never larger than the array (so the only
    # partial block is the last one), capped at MAX_TILE_ROWS.
    tile_rows = min(MAX_TILE_ROWS, (rows // ROW_ALIGN) * ROW_ALIGN)
    tiles = pl.cdiv(rows, tile_rows)

    splits = min(_num_tensorcore_splits(), tiles)
    if splits > 1:
        # Rebalance so splits * steps == tiles exactly (no phantom blocks).
        steps = pl.cdiv(tiles, splits)
        even_tiles = splits * steps
        tr = min(MAX_TILE_ROWS, _round_up(pl.cdiv(rows, even_tiles), ROW_ALIGN))
        if tr <= rows and pl.cdiv(rows, tr) == even_tiles:
            tile_rows, tiles = tr, even_tiles
        else:
            splits = 1
    steps = tiles // splits if splits > 1 else tiles

    need_mask = (rows % tile_rows) != 0
    kernel = _make_focal_bce_partial_kernel(tile_rows, steps, rows, tiles,
                                            need_mask)

    partials = pl.pallas_call(
        kernel,
        out_shape=jax.ShapeDtypeStruct((splits * SUBLANES, LANES), jnp.float32),
        grid_spec=pltpu.PrefetchScalarGridSpec(
            num_scalar_prefetch=0,
            grid=(splits, steps),
            in_specs=[
                pl.BlockSpec((tile_rows, LANES), lambda c, i: (c * steps + i, 0)),
                pl.BlockSpec((tile_rows, LANES), lambda c, i: (c * steps + i, 0)),
            ],
            out_specs=pl.BlockSpec((SUBLANES, LANES), lambda c, i: (c, 0)),
        ),
        compiler_params=pltpu.CompilerParams(
            dimension_semantics=("parallel", "arbitrary"),
        ),
    )(x2, t2)

    # Mean over the TRUE element count, then the focal transform on the mean
    # BCE (exactly what the PyTorch module does).
    bce_mean = jnp.sum(partials) / jnp.float32(n)
    bce_exp = jnp.exp(-bce_mean)
    return jnp.float32(alpha) * (1.0 - bce_exp) ** jnp.float32(gamma) * bce_mean


def _reference_focal_loss(inputs, targets, alpha=1.0, gamma=2.0):
    """Pure-JAX mirror of the PyTorch module (sigmoid + clamped-log BCE)."""
    p = jax.nn.sigmoid(inputs.reshape(-1).astype(jnp.float32))
    t = targets.reshape(-1).astype(jnp.float32)
    log_p = jnp.maximum(jnp.log(p), -100.0)
    log_1mp = jnp.maximum(jnp.log(1.0 - p), -100.0)
    bce = jnp.mean(-(t * log_p + (1.0 - t) * log_1mp))
    return alpha * (1.0 - jnp.exp(-bce)) ** gamma * bce


if __name__ == "__main__":
    key = jax.random.PRNGKey(0)
    k1, k2 = jax.random.split(key)
    # NCHW logits and binary targets, as the PyTorch module expects.
    x = jax.random.normal(k1, (2, 4, 16, 16), dtype=jnp.float32)
    y = (jax.random.uniform(k2, (2, 4, 16, 16)) > 0.5).astype(jnp.float32)

    loss = focal_loss(x, y, alpha=1.0, gamma=2.0)
    jax.block_until_ready(loss)

    ref = _reference_focal_loss(x, y, alpha=1.0, gamma=2.0)
    assert jnp.allclose(loss, ref, rtol=1e-5, atol=1e-5), (loss, ref)
    print("KERNEL_OK")
</pallas_src>

<mosaic_0001>
module attributes {stable_mosaic.version = 11 : i64} {
  func.func @kernel(%arg0: i32, %arg1: i32, %arg2: memref<16x128xf32, #tpu.memory_space<vmem>>, %arg3: memref<16x128xf32, #tpu.memory_space<vmem>>, %arg4: memref<8x128xf32, #tpu.memory_space<vmem>>) attributes {dimension_semantics = [#tpu.dimension_semantics<parallel>, #tpu.dimension_semantics<arbitrary>], iteration_bounds = array<i64: 1, 1>, scalar_prefetch = 0 : i64, scratch_operands = 0 : i64, tpu.core_type = #tpu.core_type<tc>, window_params = [{transform_indices = @transform_0, window_bounds = array<i64: 16, 128>}, {transform_indices = @transform_1, window_bounds = array<i64: 16, 128>}, {transform_indices = @transform_2, window_bounds = array<i64: 8, 128>}]} {
    %c0_i32 = arith.constant 0 : i32
    %0 = arith.cmpi eq, %arg1, %c0_i32 : i32
    %1 = arith.extui %0 : i1 to i32
    %c0_i32_0 = arith.constant 0 : i32
    %2 = arith.cmpi ne, %1, %c0_i32_0 : i32
    scf.if %2 {
      %cst_14 = arith.constant 0.000000e+00 : f32
      %36 = vector.broadcast %cst_14 : f32 to vector<8x128xf32>
      %c0_15 = arith.constant 0 : index
      %c0_16 = arith.constant 0 : index
      %37 = vector.load %arg4[%c0_15, %c0_16] : memref<8x128xf32, #tpu.memory_space<vmem>>, vector<8x128xf32>
      tpu.vector_store %arg4[%c0_15, %c0_16], %36 {strides = array<i32>} : memref<8x128xf32, #tpu.memory_space<vmem>>, vector<8x128xf32>,
    } else {
    }
    %c0 = arith.constant 0 : index
    %c0_1 = arith.constant 0 : index
    %3 = vector.load %arg2[%c0, %c0_1] : memref<16x128xf32, #tpu.memory_space<vmem>>, vector<16x128xf32>
    %c0_2 = arith.constant 0 : index
    %c0_3 = arith.constant 0 : index
    %4 = vector.load %arg3[%c0_2, %c0_3] : memref<16x128xf32, #tpu.memory_space<vmem>>, vector<16x128xf32>
    %cst = arith.constant 0.000000e+00 : f32
    %5 = vector.broadcast %cst : f32 to vector<16x128xf32>
    %6 = arith.subf %5, %3 : vector<16x128xf32>
    %cst_4 = arith.constant 0.000000e+00 : f32
    %7 = vector.broadcast %cst_4 : f32 to vector<16x128xf32>
    %8 = arith.maximumf %6, %7 : vector<16x128xf32>
    %9 = vector.broadcast %cst_4 : f32 to vector<16x128xf32>
    %10 = arith.subf %6, %9 : vector<16x128xf32>
    %11 = arith.cmpf one, %10, %10 : vector<16x128xf32>
    %12 = vector.broadcast %cst_4 : f32 to vector<16x128xf32>
    %13 = arith.addf %6, %12 : vector<16x128xf32>
    %14 = math.absf %10 : vector<16x128xf32>
    %cst_5 = arith.constant 0.000000e+00 : f32
    %15 = vector.broadcast %cst_5 : f32 to vector<16x128xf32>
    %16 = arith.subf %15, %14 : vector<16x128xf32>
    %17 = math.exp %16 : vector<16x128xf32>
    %18 = math.log1p %17 : vector<16x128xf32>
    %19 = arith.addf %8, %18 : vector<16x128xf32>
    %20 = arith.select %11, %13, %19 : vector<16x128xi1>, vector<16x128xf32>
    %cst_6 = arith.constant 1.000000e+02 : f32
    %21 = vector.broadcast %cst_6 : f32 to vector<16x128xf32>
    %22 = arith.minimumf %20, %21 : vector<16x128xf32>
    %23 = arith.mulf %4, %22 : vector<16x128xf32>
    %cst_7 = arith.constant 1.000000e+00 : f32
    %24 = vector.broadcast %cst_7 : f32 to vector<16x128xf32>
    %25 = arith.subf %24, %4 : vector<16x128xf32>
    %26 = arith.addf %20, %3 : vector<16x128xf32>
    %cst_8 = arith.constant 1.000000e+02 : f32
    %27 = vector.broadcast %cst_8 : f32 to vector<16x128xf32>
    %28 = arith.minimumf %26, %27 : vector<16x128xf32>
    %29 = arith.mulf %25, %28 : vector<16x128xf32>
    %30 = arith.addf %23, %29 : vector<16x128xf32>
    %c0_9 = arith.constant 0 : index
    %c0_10 = arith.constant 0 : index
    %31 = vector.load %arg4[%c0_9, %c0_10] : memref<8x128xf32, #tpu.memory_space<vmem>>, vector<8x128xf32>
    %32 = vector.shape_cast %30 : vector<16x128xf32> to vector<2x8x128xf32>
    %cst_11 = arith.constant dense<0.000000e+00> : vector<8x128xf32>
    %33 = vector.multi_reduction <add>, %32, %cst_11 [0] : vector<2x8x128xf32> to vector<8x128xf32>
    %34 = arith.addf %31, %33 : vector<8x128xf32>
    %c0_12 = arith.constant 0 : index
    %c0_13 = arith.constant 0 : index
    %35 = vector.load %arg4[%c0_12, %c0_13] : memref<8x128xf32, #tpu.memory_space<vmem>>, vector<8x128xf32>
    tpu.vector_store %arg4[%c0_12, %c0_13], %34 {strides = array<i32>} : memref<8x128xf32, #tpu.memory_space<vmem>>, vector<8x128xf32>,
    return
  }
  func.func @transform_0(%arg0: i32, %arg1: i32) -> (i32, i32) {
    %c1_i32 = arith.constant 1 : i32
    %0 = arith.muli %arg0, %c1_i32 : i32
    %1 = arith.addi %0, %arg1 : i32
    %c0_i32 = arith.constant 0 : i32
    %c0_i32_0 = arith.constant 0 : i32
    return %1, %c0_i32 : i32, i32
  }
  func.func @transform_1(%arg0: i32, %arg1: i32) -> (i32, i32) {
    %c1_i32 = arith.constant 1 : i32
    %0 = arith.muli %arg0, %c1_i32 : i32
    %1 = arith.addi %0, %arg1 : i32
    %c0_i32 = arith.constant 0 : i32
    %c0_i32_0 = arith.constant 0 : i32
    return %1, %c0_i32 : i32, i32
  }
  func.func @transform_2(%arg0: i32, %arg1: i32) -> (i32, i32) {
    %c0_i32 = arith.constant 0 : i32
    %c0_i32_0 = arith.constant 0 : i32
    return %arg0, %c0_i32 : i32, i32
  }
}

</mosaic_0001>

<bundles_post_ra>
// kernel: tpu_custom_call.1
= control target key start
LH: loop header
LB: loop body
LE: loop exit
PB: predicated region body
PF: predicated region fallthrough
CT: control target
= control target key end

     0   :  { %7 = vsyncpa [#allocation3], 0  ;;  %s260_s0 = inlined_call_operand.hbm [shape: f32[16,128], index: 0, kind: input, shape index: {}]   ;;  %s261_s1 = inlined_call_operand.hbm [shape: f32[16,128], index: 1, kind: input, shape index: {}]   ;;  %s262_s2 = inlined_call_operand.hbm [shape: f32[8,128], index: 2, kind: output, shape index: {}]  }
   0x1   :  { %8 = vsyncpa [#allocation6], 0 }
   0x2   :  { %9 = vsyncpa [#allocation4], 0  ;;  %s18_s11 = sshll.u32 %s260_s0, 4  ;;  %s231_s12 = smov [#allocation2]   ;;  %s19_s11 = int_to_ptr.hbm [resolvable:$true] %s18_s11 }
   0x3   :  { %s20_s13 = sshll.u32 %s231_s12, 4  ;;  %s35_s16 = sshll.u32 %s261_s1, 4  ;;  %s21_s13 = int_to_ptr.vmem [resolvable:$true] %s20_s13  ;;  %s36_s16 = int_to_ptr.hbm [resolvable:$true] %s35_s16 }
   0x4   :  { %s232_s17 = smov 128   ;;  %s233_s18 = smov 8  }
   0x5   :  { %26 = dma.hbm_to_vmem [thread:$0]  %s19_s11, 256, %s21_s13, [#allocation3], %s232_s17, %s232_s17, %s233_s18  }
   0x6   :  { %s234_s19 = smov [#allocation5]  }
   0x7   :  { %s37_s20 = sshll.u32 %s234_s19, 4  ;;  %s38_s20 = int_to_ptr.vmem [resolvable:$true] %s37_s20 }
   0x8   :  { %43 = dma.hbm_to_vmem [thread:$0]  %s36_s16, 256, %s38_s20, [#allocation6], %s232_s17, %s232_s17, %s233_s18  }
   0x9   :  { %225 = dma.done.wait [#allocation3], 256  }
   0xa   :  { %226 = vsyncadd [#allocation3], 4294967040 }
   0xb   :  { %227 = dma.done.wait [#allocation6], 256  }
   0xc   :  { %228 = vsyncadd [#allocation6], 4294967040  ;;  %v61_v0 = vld [vmem:[#allocation2] sm:$0xff]  ;;  %v62_v1 = vld [vmem:[#allocation2 + $0x8] sm:$0xff]  ;;  %s235_s0 = smov [#allocation7]   ;;  %s128_s23 = sshll.u32 %s262_s2, 4  ;;  %s129_s23 = int_to_ptr.hbm [resolvable:$true] %s128_s23 }
   0xd   :  { %v65_v2 = vsub.f32 0.0, %v61_v0  ;;  %v66_v3 = vsub.f32 0.0, %v62_v1  ;;  %v63_v29 = vld [vmem:[#allocation5] sm:$0xff]  ;;  %v64_v32 = vld [vmem:[#allocation5 + $0x8] sm:$0xff]  ;;  %s126_s1 = sshll.u32 %s235_s0, 4  ;;  %s127_s1 = int_to_ptr.vmem [resolvable:$true] %s126_s1 }
   0xe   :  { %v107_v37 = vsub.f32 1.0, %v63_v29  ;;  %v108_v40 = vsub.f32 1.0, %v64_v32 }
   0xf   :  { %v73_v4 = vand.u32 2147483647, %v65_v2  ;;  %v74_v5 = vand.u32 2147483647, %v66_v3  ;;  %v67_v22 = vmax.f32 %v65_v2, 0.0  ;;  %v68_v25 = vmax.f32 %v66_v3, 0.0 }
  0x10   :  { %vm69_vm2 = vcmp.ne.f32.partialorder %v65_v2, %v65_v2  ;;  %vm70_vm3 = vcmp.ne.f32.partialorder %v66_v3, %v66_v3 }
  0x11   :  { %v75_v6 = vsub.f32 0.0, %v73_v4  ;;  %v76_v7 = vsub.f32 0.0, %v74_v5 }
  0x13   :  { %v77_v8 = vmul.f32 1.442695, %v75_v6  ;;  %v79_v9 = vmul.f32 1.442695, %v76_v7 }
  0x15   :  { %145 = vpow2.f32 %v77_v8 }
  0x16   :  { %147 = vpow2.f32 %v79_v9 }
  0x1b   :  { %v146_v10 = vpop.eup %145 }
  0x1c   :  { %v148_v11 = vpop.eup %147  ;;  %v81_v12 = vadd.f32 1.0, %v146_v10  ;;  %v84_v13 = vmul.f32 -0.5, %v146_v10  ;;  %v87_v17 = vand.u32 2147483647, %v146_v10 }
  0x1d   :  { %v90_v14 = vadd.f32 1.0, %v148_v11  ;;  %v93_v15 = vmul.f32 -0.5, %v148_v11  ;;  %v96_v19 = vand.u32 2147483647, %v148_v11 }
  0x1e   :  { %149 = vlog2.f32 %v81_v12  ;;  %v85_v16 = vadd.f32 1.0, %v84_v13  ;;  %vm88_vm0 = vcmp.lt.f32.partialorder %v87_v17, 0.0004427343 }
  0x1f   :  { %151 = vlog2.f32 %v90_v14  ;;  %v94_v18 = vadd.f32 1.0, %v93_v15  ;;  %vm97_vm1 = vcmp.lt.f32.partialorder %v96_v19, 0.0004427343 }
  0x20   :  { %v86_v20 = vmul.f32 %v146_v10, %v85_v16 }
  0x21   :  { %v95_v23 = vmul.f32 %v148_v11, %v94_v18 }
  0x24   :  { %v150_v21 = vpop.eup %149 }
  0x25   :  { %v152_v24 = vpop.eup %151  ;;  %v83_v26 = vmul.f32 0.6931472, %v150_v21 }
  0x26   :  { %v92_v27 = vmul.f32 0.6931472, %v152_v24 }
  0x27   :  { %v89_v28 = vsel %vm88_vm0, %v86_v20, %v83_v26 }
  0x28   :  { %v98_v30 = vsel %vm97_vm1, %v95_v23, %v92_v27  ;;  %v99_v31 = vadd.f32 %v89_v28, %v67_v22 }
  0x29   :  { %v100_v33 = vadd.f32 %v98_v30, %v68_v25 }
  0x2a   :  { %v101_v34 = vsel %vm69_vm2, %v65_v2, %v99_v31 }
  0x2b   :  { %v102_v35 = vsel %vm70_vm3, %v66_v3, %v100_v33  ;;  %v103_v36 = vmin.f32 %v101_v34, 100.0  ;;  %v109_v38 = vadd.f32 %v101_v34, %v61_v0 }
  0x2c   :  { %v104_v39 = vmin.f32 %v102_v35, 100.0  ;;  %v110_v41 = vadd.f32 %v102_v35, %v62_v1 }
  0x2d   :  { %v105_v42 = vmul.f32 %v103_v36, %v63_v29  ;;  %v111_v43 = vmin.f32 %v109_v38, 100.0 }
  0x2e   :  { %v106_v44 = vmul.f32 %v104_v39, %v64_v32  ;;  %v112_v45 = vmin.f32 %v110_v41, 100.0 }
  0x2f   :  { %v113_v46 = vmul.f32 %v111_v43, %v107_v37 }
  0x30   :  { %v114_v47 = vmul.f32 %v112_v45, %v108_v40 }
  0x31   :  { %v115_v48 = vadd.f32 %v113_v46, %v105_v42 }
  0x32   :  { %v116_v49 = vadd.f32 %v114_v47, %v106_v44 }
  0x34   :  { %v118_v50 = vadd.f32 %v116_v49, %v115_v48 }
  0x36   :  { %120 = vst [vmem:[#allocation7] sm:$0xff] %v118_v50 }
  0x37   :  { %131 = dma.vmem_to_hbm [thread:$0]  %s127_s1, 128, %s129_s23, [#allocation4]  }
  0x38   :  { %229 = dma.done.wait [#allocation4], 128  }
  0x39   :  { %230 = vsyncadd [#allocation4], 4294967168 }
  0x3a   :  { %136 = vsyncpa [#allocation3], 1 }
  0x3b   :  { %137 = vsyncpa [#allocation6], 1 }
  0x3c   :  { %138 = vsyncpa [#allocation4], 1 }

</bundles_post_ra>
